<compile_context>
chip_gen: v6e
topology: v6e:2x2x1
jax: 0.10.0
libtpu: 0.0.40
codegen_flags: <defaults>
</compile_context>

<pallas_src>
import jax
import jax.numpy as jnp
from jax.experimental import pallas as pl
from jax.experimental.pallas import tpu as pltpu

IN_DIM = 3 + 3 * 2 * 10      # 63 (raw positional-encoding features)
PAD_IN = 64                  # aligned feature dim used for the layer-1 matmul
HIDDEN = 128
OUT_DIM = 4                  # real output width; stored unpadded


def _round_up(x, m):
    return ((x + m - 1) // m) * m


def tinynerf_kernel(x_ref, w1_ref, b1_ref, w2_ref, b2_ref, w3_ref, b3_ref,
                    o_ref, xpad_ref):
    # Pad the raw (tm, 63) f32 features to an aligned (tm, 64) VMEM tile.
    # Two disjoint static-slice stores; the zero column is rewritten every
    # step (1 lane, negligible) so this stays correct when the "parallel"
    # grid axis is sharded across TensorCores (v7x megacore).
    xpad_ref[:, :IN_DIM] = x_ref[...]
    xpad_ref[:, IN_DIM:] = jnp.zeros(
        (xpad_ref.shape[0], PAD_IN - IN_DIM), jnp.float32)

    # bf16 MXU operands, f32 accumulation.
    xb = xpad_ref[...].astype(jnp.bfloat16)
    h1 = jnp.dot(xb, w1_ref[...], preferred_element_type=jnp.float32)
    h1 = jnp.maximum(h1 + b1_ref[...], 0.0).astype(jnp.bfloat16)

    h2 = jnp.dot(h1, w2_ref[...], preferred_element_type=jnp.float32)
    h2 = jnp.maximum(h2 + b2_ref[...], 0.0).astype(jnp.bfloat16)
    # NOTE(v5e): if VALU ever becomes the binding slot there (no bf16 VPU),
    # the h2 -> bf16 cast can be dropped and layer 3 run with f32 operands.

    # Narrow final layer: (tm, 128) @ (128, 4) -> (tm, 4) f32, stored as-is.
    h3 = jnp.dot(h2, w3_ref[...], preferred_element_type=jnp.float32) + b3_ref[...]
    o_ref[...] = h3


def prepare_params(params):
    """One-time parameter prep (outside the hot path): bf16 weights,
    w1 row-padded 63 -> 64, biases reshaped to (1, out) f32."""
    return {
        "w1": jnp.pad(params["w1"].astype(jnp.float32),
                      ((0, PAD_IN - IN_DIM), (0, 0))).astype(jnp.bfloat16),
        "b1": params["b1"].reshape(1, HIDDEN).astype(jnp.float32),
        "w2": params["w2"].astype(jnp.bfloat16),
        "b2": params["b2"].reshape(1, HIDDEN).astype(jnp.float32),
        "w3": params["w3"].astype(jnp.bfloat16),                 # (128, 4)
        "b3": params["b3"].reshape(1, OUT_DIM).astype(jnp.float32),
    }


def tinynerf_forward(x, prepared, *, tm_max=4096):
    """x: (N, 63) float32 raw features; prepared: output of prepare_params."""
    N, F = x.shape
    assert F == IN_DIM
    x = x.astype(jnp.float32)

    # ---- batch tile: big (amortize ~0.35 us/step) but keep >=2 grid steps
    # (>=8 for large N) so both v7x TensorCores get work.
    if N >= 8 * 512:
        min_steps = 8
    elif N >= 16:
        min_steps = 2
    else:
        min_steps = 1
    tm = min(tm_max, _round_up(N, 8), _round_up(pl.cdiv(N, min_steps), 8))
    tm = max(tm, 8)
    n_pad = _round_up(N, tm)
    if n_pad != N:
        x = jnp.pad(x, ((0, n_pad - N), (0, 0)))   # batch-only pad (rare)
    grid = (n_pad // tm,)

    # ---- real double-buffered VMEM footprint (physical, lane-padded to 128).
    lane_row_bytes = 128 * 4
    x_tile = tm * lane_row_bytes          # (tm, 63) f32 tile
    out_tile = tm * lane_row_bytes        # (tm, 4) f32 tile (lane-padded)
    xpad_scr = tm * lane_row_bytes        # (tm, 64) f32 scratch
    weights = 2 * (PAD_IN * HIDDEN * 2 + HIDDEN * HIDDEN * 2
                   + HIDDEN * 128 * 2 + 3 * 128 * 4)
    footprint = 2 * (x_tile + out_tile) + xpad_scr + weights
    vmem_limit = None
    if footprint > 16 * 1024 * 1024:      # smallest scoped default (v5e)
        vmem_limit = min(footprint + (2 << 20), 48 * 1024 * 1024)

    out = pl.pallas_call(
        tinynerf_kernel,
        out_shape=jax.ShapeDtypeStruct((n_pad, OUT_DIM), jnp.float32),
        grid_spec=pltpu.PrefetchScalarGridSpec(
            num_scalar_prefetch=0,
            grid=grid,
            in_specs=[
                pl.BlockSpec((tm, IN_DIM), lambda i: (i, 0)),       # x (raw f32)
                pl.BlockSpec((PAD_IN, HIDDEN), lambda i: (0, 0)),   # w1 (64,128)
                pl.BlockSpec((1, HIDDEN), lambda i: (0, 0)),        # b1
                pl.BlockSpec((HIDDEN, HIDDEN), lambda i: (0, 0)),   # w2
                pl.BlockSpec((1, HIDDEN), lambda i: (0, 0)),        # b2
                pl.BlockSpec((HIDDEN, OUT_DIM), lambda i: (0, 0)),  # w3 (128,4)
                pl.BlockSpec((1, OUT_DIM), lambda i: (0, 0)),       # b3
            ],
            out_specs=pl.BlockSpec((tm, OUT_DIM), lambda i: (i, 0)),
            scratch_shapes=[pltpu.VMEM((tm, PAD_IN), jnp.float32)],
        ),
        compiler_params=pltpu.CompilerParams(
            dimension_semantics=("parallel",),
            vmem_limit_bytes=vmem_limit,
        ),
    )(x, prepared["w1"], prepared["b1"], prepared["w2"], prepared["b2"],
      prepared["w3"], prepared["b3"])

    return out if n_pad == N else out[:N]


def init_params(key):
    """Deterministic synthetic parameters matching nn.Linear shapes.
    PyTorch stores weight as (out, in); we keep them as (in, out) so the
    kernel computes x @ W + b directly."""
    k1, k2, k3, k4, k5, k6 = jax.random.split(key, 6)

    def lin_init(kw, kb, fan_in, fan_out):
        bound = 1.0 / jnp.sqrt(fan_in)
        w = jax.random.uniform(kw, (fan_in, fan_out), jnp.float32, -bound, bound)
        b = jax.random.uniform(kb, (fan_out,), jnp.float32, -bound, bound)
        return w, b

    w1, b1 = lin_init(k1, k2, IN_DIM, HIDDEN)
    w2, b2 = lin_init(k3, k4, HIDDEN, HIDDEN)
    w3, b3 = lin_init(k5, k6, HIDDEN, OUT_DIM)
    return {"w1": w1, "b1": b1, "w2": w2, "b2": b2, "w3": w3, "b3": b3}


def reference_forward(x, p):
    h1 = jnp.maximum(x @ p["w1"] + p["b1"], 0.0)
    h2 = jnp.maximum(h1 @ p["w2"] + p["b2"], 0.0)
    return h2 @ p["w3"] + p["b3"]


if __name__ == "__main__":
    key = jax.random.PRNGKey(0)
    kp, kx = jax.random.split(key)

    params = init_params(kp)
    prepared = prepare_params(params)          # one-time, outside hot path

    # Small batch of "sample points along rays": N = 256, feature dim 63.
    N = 256
    x = jax.random.normal(kx, (N, IN_DIM), dtype=jnp.float32)

    out = tinynerf_forward(x, prepared, tm_max=4096)
    out = jax.block_until_ready(out)

    ref = reference_forward(x, params)
    assert out.shape == (N, OUT_DIM) and out.dtype == jnp.float32
    # bf16 matmul operands (f32 accumulation) -> loosened tolerance vs f32 ref.
    assert jnp.allclose(out, ref, atol=5e-2, rtol=5e-2), (
        float(jnp.max(jnp.abs(out - ref))))

    print("KERNEL_OK")
</pallas_src>

<mosaic_0001>
module attributes {stable_mosaic.version = 11 : i64} {
  func.func @tinynerf_kernel(%arg0: i32, %arg1: memref<128x63xf32, #tpu.memory_space<vmem>>, %arg2: memref<64x128xbf16, #tpu.memory_space<vmem>>, %arg3: memref<1x128xf32, #tpu.memory_space<vmem>>, %arg4: memref<128x128xbf16, #tpu.memory_space<vmem>>, %arg5: memref<1x128xf32, #tpu.memory_space<vmem>>, %arg6: memref<128x4xbf16, #tpu.memory_space<vmem>>, %arg7: memref<1x4xf32, #tpu.memory_space<vmem>>, %arg8: memref<128x4xf32, #tpu.memory_space<vmem>>, %arg9: memref<128x64xf32, #tpu.memory_space<vmem>>) attributes {dimension_semantics = [#tpu.dimension_semantics<parallel>], iteration_bounds = array<i64: 2>, scalar_prefetch = 0 : i64, scratch_operands = 1 : i64, tpu.core_type = #tpu.core_type<tc>, window_params = [{transform_indices = @transform_0, window_bounds = array<i64: 128, 63>}, {pipeline_mode = #tpu.pipeline_mode<synchronous>, transform_indices = @transform_1, window_bounds = array<i64: 64, 128>}, {pipeline_mode = #tpu.pipeline_mode<synchronous>, transform_indices = @transform_2, window_bounds = array<i64: 1, 128>}, {pipeline_mode = #tpu.pipeline_mode<synchronous>, transform_indices = @transform_3, window_bounds = array<i64: 128, 128>}, {pipeline_mode = #tpu.pipeline_mode<synchronous>, transform_indices = @transform_4, window_bounds = array<i64: 1, 128>}, {pipeline_mode = #tpu.pipeline_mode<synchronous>, transform_indices = @transform_5, window_bounds = array<i64: 128, 4>}, {pipeline_mode = #tpu.pipeline_mode<synchronous>, transform_indices = @transform_6, window_bounds = array<i64: 1, 4>}, {transform_indices = @transform_7, window_bounds = array<i64: 128, 4>}]} {
    %c0 = arith.constant 0 : index
    %c0_0 = arith.constant 0 : index
    %0 = vector.load %arg1[%c0, %c0_0] : memref<128x63xf32, #tpu.memory_space<vmem>>, vector<128x63xf32>
    %c0_1 = arith.constant 0 : index
    %c0_2 = arith.constant 0 : index
    %1 = vector.load %arg9[%c0_1, %c0_2] : memref<128x64xf32, #tpu.memory_space<vmem>>, vector<128x63xf32>
    tpu.vector_store %arg9[%c0_1, %c0_2], %0 {strides = array<i32>} : memref<128x64xf32, #tpu.memory_space<vmem>>, vector<128x63xf32>,
    %cst = arith.constant 0.000000e+00 : f32
    %2 = vector.broadcast %cst : f32 to vector<128x1xf32>
    %c0_3 = arith.constant 0 : index
    %c63 = arith.constant 63 : index
    %3 = vector.load %arg9[%c0_3, %c63] : memref<128x64xf32, #tpu.memory_space<vmem>>, vector<128x1xf32>
    tpu.vector_store %arg9[%c0_3, %c63], %2 {strides = array<i32>} : memref<128x64xf32, #tpu.memory_space<vmem>>, vector<128x1xf32>,
    %c0_4 = arith.constant 0 : index
    %c0_5 = arith.constant 0 : index
    %4 = vector.load %arg9[%c0_4, %c0_5] : memref<128x64xf32, #tpu.memory_space<vmem>>, vector<128x64xf32>
    %5 = arith.truncf %4 : vector<128x64xf32> to vector<128x64xbf16>
    %c0_6 = arith.constant 0 : index
    %c0_7 = arith.constant 0 : index
    %6 = vector.load %arg2[%c0_6, %c0_7] : memref<64x128xbf16, #tpu.memory_space<vmem>>, vector<64x128xbf16>
    %cst_8 = arith.constant dense<0.000000e+00> : vector<128x128xf32>
    %7 = tpu.matmul %5, %6, %cst_8 {dimension_numbers = #tpu.dot_dimension_numbers<[1], [0], [0], [1], [0, 0, 1, 1], [], []>} : vector<128x64xbf16>, vector<64x128xbf16>, vector<128x128xf32> -> vector<128x128xf32>
    %c0_9 = arith.constant 0 : index
    %c0_10 = arith.constant 0 : index
    %8 = vector.load %arg3[%c0_9, %c0_10] : memref<1x128xf32, #tpu.memory_space<vmem>>, vector<1x128xf32>
    %9 = vector.broadcast %8 : vector<1x128xf32> to vector<128x128xf32>
    %10 = arith.addf %7, %9 : vector<128x128xf32>
    %cst_11 = arith.constant 0.000000e+00 : f32
    %11 = vector.broadcast %cst_11 : f32 to vector<128x128xf32>
    %12 = arith.maximumf %10, %11 : vector<128x128xf32>
    %13 = arith.truncf %12 : vector<128x128xf32> to vector<128x128xbf16>
    %c0_12 = arith.constant 0 : index
    %c0_13 = arith.constant 0 : index
    %14 = vector.load %arg4[%c0_12, %c0_13] : memref<128x128xbf16, #tpu.memory_space<vmem>>, vector<128x128xbf16>
    %cst_14 = arith.constant dense<0.000000e+00> : vector<128x128xf32>
    %15 = tpu.matmul %13, %14, %cst_14 {dimension_numbers = #tpu.dot_dimension_numbers<[1], [0], [0], [1], [0, 0, 1, 1], [], []>} : vector<128x128xbf16>, vector<128x128xbf16>, vector<128x128xf32> -> vector<128x128xf32>
    %c0_15 = arith.constant 0 : index
    %c0_16 = arith.constant 0 : index
    %16 = vector.load %arg5[%c0_15, %c0_16] : memref<1x128xf32, #tpu.memory_space<vmem>>, vector<1x128xf32>
    %17 = vector.broadcast %16 : vector<1x128xf32> to vector<128x128xf32>
    %18 = arith.addf %15, %17 : vector<128x128xf32>
    %cst_17 = arith.constant 0.000000e+00 : f32
    %19 = vector.broadcast %cst_17 : f32 to vector<128x128xf32>
    %20 = arith.maximumf %18, %19 : vector<128x128xf32>
    %21 = arith.truncf %20 : vector<128x128xf32> to vector<128x128xbf16>
    %c0_18 = arith.constant 0 : index
    %c0_19 = arith.constant 0 : index
    %22 = vector.load %arg6[%c0_18, %c0_19] : memref<128x4xbf16, #tpu.memory_space<vmem>>, vector<128x4xbf16>
    %cst_20 = arith.constant dense<0.000000e+00> : vector<128x4xf32>
    %23 = tpu.matmul %21, %22, %cst_20 {dimension_numbers = #tpu.dot_dimension_numbers<[1], [0], [0], [1], [0, 0, 1, 1], [], []>} : vector<128x128xbf16>, vector<128x4xbf16>, vector<128x4xf32> -> vector<128x4xf32>
    %c0_21 = arith.constant 0 : index
    %c0_22 = arith.constant 0 : index
    %24 = vector.load %arg7[%c0_21, %c0_22] : memref<1x4xf32, #tpu.memory_space<vmem>>, vector<1x4xf32>
    %25 = vector.broadcast %24 : vector<1x4xf32> to vector<128x4xf32>
    %26 = arith.addf %23, %25 : vector<128x4xf32>
    %c0_23 = arith.constant 0 : index
    %c0_24 = arith.constant 0 : index
    %27 = vector.load %arg8[%c0_23, %c0_24] : memref<128x4xf32, #tpu.memory_space<vmem>>, vector<128x4xf32>
    tpu.vector_store %arg8[%c0_23, %c0_24], %26 {strides = array<i32>} : memref<128x4xf32, #tpu.memory_space<vmem>>, vector<128x4xf32>,
    return
  }
  func.func @transform_0(%arg0: i32) -> (i32, i32) {
    %c0_i32 = arith.constant 0 : i32
    %c0_i32_0 = arith.constant 0 : i32
    return %arg0, %c0_i32 : i32, i32
  }
  func.func @transform_1(%arg0: i32) -> (i32, i32) {
    %c0_i32 = arith.constant 0 : i32
    %c0_i32_0 = arith.constant 0 : i32
    %c0_i32_1 = arith.constant 0 : i32
    return %c0_i32, %c0_i32_0 : i32, i32
  }
  func.func @transform_2(%arg0: i32) -> (i32, i32) {
    %c0_i32 = arith.constant 0 : i32
    %c0_i32_0 = arith.constant 0 : i32
    %c0_i32_1 = arith.constant 0 : i32
    return %c0_i32, %c0_i32_0 : i32, i32
  }
  func.func @transform_3(%arg0: i32) -> (i32, i32) {
    %c0_i32 = arith.constant 0 : i32
    %c0_i32_0 = arith.constant 0 : i32
    %c0_i32_1 = arith.constant 0 : i32
    return %c0_i32, %c0_i32_0 : i32, i32
  }
  func.func @transform_4(%arg0: i32) -> (i32, i32) {
    %c0_i32 = arith.constant 0 : i32
    %c0_i32_0 = arith.constant 0 : i32
    %c0_i32_1 = arith.constant 0 : i32
    return %c0_i32, %c0_i32_0 : i32, i32
  }
  func.func @transform_5(%arg0: i32) -> (i32, i32) {
    %c0_i32 = arith.constant 0 : i32
    %c0_i32_0 = arith.constant 0 : i32
    %c0_i32_1 = arith.constant 0 : i32
    return %c0_i32, %c0_i32_0 : i32, i32
  }
  func.func @transform_6(%arg0: i32) -> (i32, i32) {
    %c0_i32 = arith.constant 0 : i32
    %c0_i32_0 = arith.constant 0 : i32
    %c0_i32_1 = arith.constant 0 : i32
    return %c0_i32, %c0_i32_0 : i32, i32
  }
  func.func @transform_7(%arg0: i32) -> (i32, i32) {
    %c0_i32 = arith.constant 0 : i32
    %c0_i32_0 = arith.constant 0 : i32
    return %arg0, %c0_i32 : i32, i32
  }
}

</mosaic_0001>

<bundles_post_ra>
// kernel: tpu_custom_call.1
= control target key start
LH: loop header
LB: loop body
LE: loop exit
PB: predicated region body
PF: predicated region fallthrough
CT: control target
= control target key end

     0   :  { %s1243_s24 = smov 0   ;;  %s1434_s0 = inlined_call_operand.vmem [shape: f32[256,63], index: 0, kind: input, shape index: {}]   ;;  %s1435_s1 = inlined_call_operand.vmem [shape: bf16[64,128], index: 1, kind: input, shape index: {}]   ;;  %s1436_s2 = inlined_call_operand.vmem [shape: f32[1,128], index: 2, kind: input, shape index: {}]   ;;  %s1437_s3 = inlined_call_operand.vmem [shape: bf16[128,128], index: 3, kind: input, shape index: {}]   ;;  %s1438_s4 = inlined_call_operand.vmem [shape: f32[1,128], index: 4, kind: input, shape index: {}]   ;;  %s1439_s5 = inlined_call_operand.vmem [shape: bf16[128,4], index: 5, kind: input, shape index: {}]   ;;  %s1440_s6 = inlined_call_operand.vmem [shape: f32[1,4], index: 6, kind: input, shape index: {}]   ;;  %s1441_s7 = inlined_call_operand.vmem [shape: f32[256,4], index: 7, kind: output, shape index: {}]  }
   0x1 LB: > { %s975_s25 = sadd.s32 4294967295, %s1200_s24   ;;  %p979_p0 = scmp.ge.s32.totalorder %s1200_s24, 1  ;;  %s1200_s24 = sphi %s1243_s24, %s17_s24  }
   0x2   : > { %p238_p1 = scmp.lt.s32.totalorder %s1200_s24, 3 }
   0x4   : > { %p239_p2 = pnand %p979_p0, %p238_p1 }
   0x5   : > { %s980_s28 = sshll.u32 (!%p239_p2), %s975_s25, 4 }
   0x6   : > { %242 = sbr.rel (%p239_p2) target bundleno = 666 (0x29a), region = 48  ;;  %p271_p3 = scmp.lt.s32.totalorder (!%p239_p2), %s980_s28, 31 }
   0xb   : > { %v1174_v0 = vld [vmem:[%s1435_s1 + $0x18] sm:$0xff]   ;;  %v1175_v1 = vld [vmem:[%s1435_s1 + $0x10] sm:$0xff]   ;;  %v1176_v2 = vld [vmem:[%s1435_s1 + $0x8] sm:$0xff]   ;;  %s1443_s28 = smov (!%p271_p3, %s980_s28), 31  ;;  %vm299_vm0 = vcmask 515072   ;;  %vm316_vm1 = vcmask 523768  }
   0xc   : > { %1061 = vmatprep.subr.bf16.mxu0 %v1174_v0  ;;  %v1178_v3 = vld [vmem:[%s1437_s3 + $0x38] sm:$0xff]   ;;  %s981_s12 = sshll.u32 %s1443_s28, 3  ;;  %v1179_v4 = vld [vmem:[%s1437_s3 + $0x30] sm:$0xff]   ;;  %v1177_v5 = vld [vmem:[%s1435_s1] sm:$0xff]   ;;  %v1202_v12 = vmov 0.0   ;;  %vm396_vm2 = vcmask 523264  }
   0xd   : > { %1062 = vmatpush3.bf16.msra.mxu0 %v1174_v0  ;;  %s1277_s19 = scalar_lea.vmem %s1434_s0, %s981_s12  ;;  %1085 = vmatprep.subr.bf16.mxu1 %v1178_v3  ;;  %v1180_v23 = vld [vmem:[%s1437_s3 + $0x28] sm:$0xff]   ;;  %v1181_v24 = vld [vmem:[%s1437_s3 + $0x20] sm:$0xff]   ;;  %v1182_v25 = vld [vmem:[%s1437_s3 + $0x18] sm:$0xff]   ;;  %s1397_s16 = scalar_lea.vmem %s1441_s7, %s981_s12  ;;  %vm902_vm3 = vcmask 31744  }
   0xe   : > { %1063 = vmatprep.subr.bf16.mxu0 %v1175_v1  ;;  %v283_v6 = vld [vmem:[%s1277_s19] sm:$0xff]  ;;  %v284_v7 = vld [vmem:[%s1277_s19 + $0x8] sm:$0xff]  ;;  %v285_v8 = vld [vmem:[%s1277_s19 + $0x10] sm:$0xff]  ;;  %1086 = vmatpush3.bf16.msra.mxu1 %v1178_v3 }
   0xf   : > { %300 = vst.msk [vmem:[#allocation2] sm:$0xff] %vm299_vm0, %v283_v6  ;;  %301 = vst.msk [vmem:[#allocation2 + $0x8] sm:$0xff] %vm299_vm0, %v284_v7  ;;  %v286_v9 = vld [vmem:[%s1277_s19 + $0x18] sm:$0xff]  ;;  %v287_v10 = vld [vmem:[%s1277_s19 + $0x20] sm:$0xff]  ;;  %1087 = vmatprep.subr.bf16.mxu1 %v1179_v4 }
  0x10   : > { %302 = vst.msk [vmem:[#allocation2 + $0x10] sm:$0xff] %vm299_vm0, %v285_v8  ;;  %v288_v11 = vld [vmem:[%s1277_s19 + $0x28] sm:$0xff]  ;;  %303 = vst.msk [vmem:[#allocation2 + $0x18] sm:$0xff] %vm299_vm0, %v286_v9  ;;  %v289_v13 = vld [vmem:[%s1277_s19 + $0x30] sm:$0xff] }
  0x11   : > { %1064 = vmatpush3.bf16.msra.mxu0 %v1175_v1  ;;  %317 = vst.msk [vmem:[#allocation2] sm:$0xff] %vm316_vm1, %v1202_v12  ;;  %318 = vst.msk [vmem:[#allocation2 + $0x8] sm:$0xff] %vm316_vm1, %v1202_v12  ;;  %v290_v14 = vld [vmem:[%s1277_s19 + $0x38] sm:$0xff]  ;;  %v291_v15 = vld [vmem:[%s1277_s19 + $0x40] sm:$0xff] }
  0x12   : > { %1065 = vmatprep.subr.bf16.mxu0 %v1176_v2  ;;  %319 = vst.msk [vmem:[#allocation2 + $0x10] sm:$0xff] %vm316_vm1, %v1202_v12  ;;  %320 = vst.msk [vmem:[#allocation2 + $0x18] sm:$0xff] %vm316_vm1, %v1202_v12  ;;  %v292_v16 = vld [vmem:[%s1277_s19 + $0x48] sm:$0xff]  ;;  %v293_v17 = vld [vmem:[%s1277_s19 + $0x50] sm:$0xff]  ;;  %1088 = vmatpush3.bf16.msra.mxu1 %v1179_v4 }
  0x13   : > { %304 = vst.msk [vmem:[#allocation2 + $0x20] sm:$0xff] %vm299_vm0, %v287_v10  ;;  %305 = vst.msk [vmem:[#allocation2 + $0x28] sm:$0xff] %vm299_vm0, %v288_v11  ;;  %v294_v18 = vld [vmem:[%s1277_s19 + $0x58] sm:$0xff]  ;;  %v295_v19 = vld [vmem:[%s1277_s19 + $0x60] sm:$0xff]  ;;  %1089 = vmatprep.subr.bf16.mxu1 %v1180_v23 }
  0x14   : > { %321 = vst.msk [vmem:[#allocation2 + $0x20] sm:$0xff] %vm316_vm1, %v1202_v12  ;;  %322 = vst.msk [vmem:[#allocation2 + $0x28] sm:$0xff] %vm316_vm1, %v1202_v12  ;;  %v296_v20 = vld [vmem:[%s1277_s19 + $0x68] sm:$0xff]  ;;  %v297_v21 = vld [vmem:[%s1277_s19 + $0x70] sm:$0xff] }
  0x15   : > { %306 = vst.msk [vmem:[#allocation2 + $0x30] sm:$0xff] %vm299_vm0, %v289_v13  ;;  %307 = vst.msk [vmem:[#allocation2 + $0x38] sm:$0xff] %vm299_vm0, %v290_v14  ;;  %1066 = vmatpush3.bf16.msra.mxu0 %v1176_v2  ;;  %v298_v22 = vld [vmem:[%s1277_s19 + $0x78] sm:$0xff]  ;;  %v1183_v50 = vld [vmem:[%s1437_s3 + $0x10] sm:$0xff]  }
  0x16   : > { %308 = vst.msk [vmem:[#allocation2 + $0x40] sm:$0xff] %vm299_vm0, %v291_v15  ;;  %309 = vst.msk [vmem:[#allocation2 + $0x48] sm:$0xff] %vm299_vm0, %v292_v16  ;;  %1067 = vmatprep.subr.bf16.mxu0 %v1177_v5  ;;  %1090 = vmatpush3.bf16.msra.mxu1 %v1180_v23  ;;  %v1184_v51 = vld [vmem:[%s1437_s3 + $0x8] sm:$0xff]   ;;  %v1185_v52 = vld [vmem:[%s1437_s3] sm:$0xff]  }
  0x17   : > { %323 = vst.msk [vmem:[#allocation2 + $0x30] sm:$0xff] %vm316_vm1, %v1202_v12  ;;  %324 = vst.msk [vmem:[#allocation2 + $0x38] sm:$0xff] %vm316_vm1, %v1202_v12  ;;  %1091 = vmatprep.subr.bf16.mxu1 %v1181_v24  ;;  %v1186_v53 = vld [vmem:[%s1439_s5 + $0x38] sm:$0xff]   ;;  %v1187_v54 = vld [vmem:[%s1439_s5 + $0x30] sm:$0xff]  }
  0x18   : > { %325 = vst.msk [vmem:[#allocation2 + $0x40] sm:$0xff] %vm316_vm1, %v1202_v12  ;;  %326 = vst.msk [vmem:[#allocation2 + $0x48] sm:$0xff] %vm316_vm1, %v1202_v12  ;;  %v333_v26 = vld [vmem:[#allocation2] sm:$0xff]  ;;  %v334_v27 = vld [vmem:[#allocation2 + $0x8] sm:$0xff] }
  0x19   : > { %310 = vst.msk [vmem:[#allocation2 + $0x50] sm:$0xff] %vm299_vm0, %v293_v17  ;;  %311 = vst.msk [vmem:[#allocation2 + $0x58] sm:$0xff] %vm299_vm0, %v294_v18  ;;  %1068 = vmatpush3.bf16.msra.mxu0 %v1177_v5  ;;  %v335_v28 = vld [vmem:[#allocation2 + $0x10] sm:$0xff]  ;;  %v349_v29 = vpack.c.bf16 %v334_v27, %v333_v26  ;;  %v336_v30 = vld [vmem:[#allocation2 + $0x18] sm:$0xff] }
  0x1a   : > { %327 = vst.msk [vmem:[#allocation2 + $0x50] sm:$0xff] %vm316_vm1, %v1202_v12  ;;  %328 = vst.msk [vmem:[#allocation2 + $0x58] sm:$0xff] %vm316_vm1, %v1202_v12  ;;  %v350_v33 = vpack.c.bf16 %v336_v30, %v335_v28  ;;  %1092 = vmatpush3.bf16.msra.mxu1 %v1181_v24  ;;  %1117 = vmatprep.subr.bf16.mxu0 %v1186_v53  ;;  %v1188_v55 = vld [vmem:[%s1439_s5 + $0x28] sm:$0xff]   ;;  %v1189_v56 = vld [vmem:[%s1439_s5 + $0x20] sm:$0xff]  }
  0x1b   : > { %312 = vst.msk [vmem:[#allocation2 + $0x60] sm:$0xff] %vm299_vm0, %v295_v19  ;;  %313 = vst.msk [vmem:[#allocation2 + $0x68] sm:$0xff] %vm299_vm0, %v296_v20  ;;  %v337_v31 = vld [vmem:[#allocation2 + $0x20] sm:$0xff]  ;;  %v338_v32 = vld [vmem:[#allocation2 + $0x28] sm:$0xff]  ;;  %1069 = vmatprep.mubr.msk.bf16.mxu0 %vm396_vm2, %v349_v29  ;;  %1093 = vmatprep.subr.bf16.mxu1 %v1182_v25 }
  0x1c   : > { %314 = vst.msk [vmem:[#allocation2 + $0x70] sm:$0xff] %vm299_vm0, %v297_v21  ;;  %315 = vst.msk [vmem:[#allocation2 + $0x78] sm:$0xff] %vm299_vm0, %v298_v22  ;;  %v351_v34 = vpack.c.bf16 %v338_v32, %v337_v31  ;;  %1070 = vmatmul.mubr.msk.bf16.vlgmr.msra.gmra.mxu0 %vm396_vm2, %v350_v33  ;;  %v1368_v57 = vld [vmem:[%s1439_s5 + $0x18] sm:$0xff]   ;;  %v984_v60 = vld [vmem:[%s1436_s2] ss:$0 sm:$0xff] }
  0x1d   : > { %329 = vst.msk [vmem:[#allocation2 + $0x60] sm:$0xff] %vm316_vm1, %v1202_v12  ;;  %330 = vst.msk [vmem:[#allocation2 + $0x68] sm:$0xff] %vm316_vm1, %v1202_v12  ;;  %1118 = vmatpush3.bf16.msra.mxu0 %v1186_v53 }
  0x1e   : > { %331 = vst.msk [vmem:[#allocation2 + $0x70] sm:$0xff] %vm316_vm1, %v1202_v12  ;;  %332 = vst.msk [vmem:[#allocation2 + $0x78] sm:$0xff] %vm316_vm1, %v1202_v12  ;;  %v339_v35 = vld [vmem:[#allocation2 + $0x30] sm:$0xff]  ;;  %v340_v36 = vld [vmem:[#allocation2 + $0x38] sm:$0xff]  ;;  %1073 = vmatprep.mubr.msk.bf16.mxu0 %vm396_vm2, %v351_v34  ;;  %1094 = vmatpush3.bf16.msra.mxu1 %v1182_v25 }
  0x1f   : > { %v341_v37 = vld [vmem:[#allocation2 + $0x40] sm:$0xff]  ;;  %v342_v38 = vld [vmem:[#allocation2 + $0x48] sm:$0xff]  ;;  %v352_v39 = vpack.c.bf16 %v340_v36, %v339_v35  ;;  %1095 = vmatprep.subr.bf16.mxu1 %v1183_v50  ;;  %1119 = vmatprep.subr.bf16.mxu0 %v1187_v54 }
  0x20   : > { %v353_v40 = vpack.c.bf16 %v342_v38, %v341_v37 }
  0x21   : > { %v343_v41 = vld [vmem:[#allocation2 + $0x50] sm:$0xff]  ;;  %v344_v42 = vld [vmem:[#allocation2 + $0x58] sm:$0xff]  ;;  %1120 = vmatpush3.bf16.msra.mxu0 %v1187_v54 }
  0x22   : > { %v354_v45 = vpack.c.bf16 %v344_v42, %v343_v41  ;;  %1096 = vmatpush3.bf16.msra.mxu1 %v1183_v50  ;;  %1121 = vmatprep.subr.bf16.mxu0 %v1188_v55 }
  0x23   : > { %1097 = vmatprep.subr.bf16.mxu1 %v1184_v51 }
  0x24   : > { %1074 = vmatmul.mubr.msk.bf16.gmra.mxu0 %vm396_vm2, %v352_v39  ;;  %v345_v43 = vld [vmem:[#allocation2 + $0x60] sm:$0xff]  ;;  %v346_v44 = vld [vmem:[#allocation2 + $0x68] sm:$0xff] }
  0x25   : > { %1077 = vmatprep.mubr.msk.bf16.mxu0 %vm396_vm2, %v353_v40  ;;  %v355_v46 = vpack.c.bf16 %v346_v44, %v345_v43  ;;  %v347_v47 = vld [vmem:[#allocation2 + $0x70] sm:$0xff]  ;;  %v348_v48 = vld [vmem:[#allocation2 + $0x78] sm:$0xff]  ;;  %1122 = vmatpush3.bf16.msra.mxu0 %v1188_v55 }
  0x26   : > { %v356_v49 = vpack.c.bf16 %v348_v48, %v347_v47  ;;  %1098 = vmatpush3.bf16.msra.mxu1 %v1184_v51  ;;  %1123 = vmatprep.subr.bf16.mxu0 %v1189_v56  ;;  %v1191_v51 = vld [vmem:[%s1439_s5 + $0x10] sm:$0xff]  }
  0x27   : > { %1099 = vmatprep.subr.bf16.mxu1 %v1185_v52 }
  0x29   : > { %1124 = vmatpush3.bf16.msra.mxu0 %v1189_v56 }
  0x2a   : > { %1100 = vmatpush3.bf16.msra.mxu1 %v1185_v52  ;;  %1125 = vmatprep.subr.bf16.mxu0 %v1368_v57  ;;  %v1192_v52 = vld [vmem:[%s1439_s5 + $0x8] sm:$0xff]  }
  0x2b   : > { %1149 = vmatprep.subr.bf16.mxu1 %v1186_v53 }
  0x2c   : > { %1078 = vmatmul.mubr.msk.bf16.gmra.mxu0 %vm396_vm2, %v354_v45 }
  0x2d   : > { %1081 = vmatprep.mubr.msk.bf16.mxu0 %vm396_vm2, %v355_v46  ;;  %1126 = vmatpush3.bf16.msra.mxu0 %v1368_v57 }
  0x2e   : > { %1127 = vmatprep.subr.bf16.mxu0 %v1191_v51 }
  0x31   : > { %1128 = vmatpush3.bf16.msra.mxu0 %v1191_v51 }
  0x32   : > { %1129 = vmatprep.subr.bf16.mxu0 %v1192_v52 }
  0x34   : > { %1082 = vmatmul.mubr.msk.bf16.gmra.mxu0 %vm396_vm2, %v356_v49 }
  0x35   : > { %1130 = vmatpush3.bf16.msra.mxu0 %v1192_v52 }
  0xdc   : > { %v1071_v58 = vpop.f32.mrf.mxu0 }
  0xdd   : > { %v464_v0 = vadd.f32 %v1071_v58, %v984_v60 }
  0xde   : > { %v455_v59 = vpop.f32.mrf.mxu0 }
  0xdf   : > { %v456_v62 = vadd.f32 %v984_v60, %v455_v59  ;;  %v520_v7 = vmax.f32 %v464_v0, 0.0 }
  0xe0   : > { %v1072_v61 = vpop.f32.mrf.mxu0 }
  0xe1   : > { %v467_v63 = vadd.f32 %v1072_v61, %v984_v60  ;;  %v518_v5 = vmax.f32 %v456_v62, 0.0 }
  0xe2   : > { %v458_v1 = vpop.f32.mrf.mxu0 }
  0xe3   : > { %v459_v2 = vadd.f32 %v984_v60, %v458_v1  ;;  %v521_v3 = vmax.f32 %v467_v63, 0.0 }
  0xe4   : > { %v1075_v4 = vpop.f32.mrf.mxu0 }
  0xe5   : > { %v519_v6 = vmax.f32 %v459_v2, 0.0  ;;  %v535_v10 = vpack.c.bf16 %v521_v3, %v520_v7  ;;  %v480_v14 = vadd.f32 %v1075_v4, %v984_v60 }
  0xe6   : > { %v471_v8 = vpop.f32.mrf.mxu0 }
  0xe7   : > { %v534_v9 = vpack.c.bf16 %v519_v6, %v518_v5  ;;  %v472_v12 = vadd.f32 %v984_v60, %v471_v8  ;;  %v524_v21 = vmax.f32 %v480_v14, 0.0 }
  0xe8   : > { %v1076_v11 = vpop.f32.mrf.mxu0 }
  0xe9   : > { %v483_v13 = vadd.f32 %v1076_v11, %v984_v60  ;;  %1101 = vmatprep.mubr.bf16.mxu1 %v534_v9  ;;  %v522_v19 = vmax.f32 %v472_v12, 0.0 }
  0xea   : > { %v474_v15 = vpop.f32.mrf.mxu0  ;;  %1102 = vmatmul.mubr.bf16.vlgmr.msra.gmra.mxu1 %v535_v10 }
  0xeb   : > { %v475_v16 = vadd.f32 %v984_v60, %v474_v15  ;;  %1157 = vmatpush3.bf16.msra.mxu1 %v1186_v53  ;;  %v525_v17 = vmax.f32 %v483_v13, 0.0  ;;  %v1193_v53 = vld [vmem:[%s1439_s5] sm:$0xff]  }
  0xec   : > { %v1079_v18 = vpop.f32.mrf.mxu0  ;;  %1150 = vmatprep.subr.bf16.mxu1 %v1187_v54  ;;  %1131 = vmatprep.subr.bf16.mxu0 %v1193_v53 }
  0xed   : > { %v523_v20 = vmax.f32 %v475_v16, 0.0  ;;  %v537_v24 = vpack.c.bf16 %v525_v17, %v524_v21  ;;  %v496_v28 = vadd.f32 %v1079_v18, %v984_v60  ;;  %1132 = vmatpush3.bf16.msra.mxu0 %v1193_v53 }
  0xee   : > { %v487_v22 = vpop.f32.mrf.mxu0 }
  0xef   : > { %v536_v23 = vpack.c.bf16 %v523_v20, %v522_v19  ;;  %1158 = vmatpush3.bf16.msra.mxu1 %v1187_v54  ;;  %v488_v26 = vadd.f32 %v984_v60, %v487_v22  ;;  %v528_v35 = vmax.f32 %v496_v28, 0.0 }
  0xf0   : > { %v1080_v25 = vpop.f32.mrf.mxu0  ;;  %1151 = vmatprep.subr.bf16.mxu1 %v1188_v55 }
  0xf1   : > { %v499_v27 = vadd.f32 %v1080_v25, %v984_v60  ;;  %1105 = vmatprep.mubr.bf16.mxu1 %v536_v23  ;;  %v526_v33 = vmax.f32 %v488_v26, 0.0 }
  0xf2   : > { %v490_v29 = vpop.f32.mrf.mxu0  ;;  %1106 = vmatmul.mubr.bf16.gmra.mxu1 %v537_v24 }
  0xf3   : > { %v491_v30 = vadd.f32 %v984_v60, %v490_v29  ;;  %1159 = vmatpush3.bf16.msra.mxu1 %v1188_v55  ;;  %v529_v31 = vmax.f32 %v499_v27, 0.0 }
  0xf4   : > { %v1083_v32 = vpop.f32.mrf.mxu0  ;;  %1152 = vmatprep.subr.bf16.mxu1 %v1189_v56 }
  0xf5   : > { %v527_v34 = vmax.f32 %v491_v30, 0.0  ;;  %v539_v38 = vpack.c.bf16 %v529_v31, %v528_v35  ;;  %v512_v42 = vadd.f32 %v1083_v32, %v984_v60 }
  0xf6   : > { %v503_v36 = vpop.f32.mrf.mxu0 }
  0xf7   : > { %v538_v37 = vpack.c.bf16 %v527_v34, %v526_v33  ;;  %1160 = vmatpush3.bf16.msra.mxu1 %v1189_v56  ;;  %v504_v40 = vadd.f32 %v984_v60, %v503_v36  ;;  %v532_v48 = vmax.f32 %v512_v42, 0.0  ;;  %v997_v56 = vld [vmem:[%s1438_s4] ss:$0 sm:$0xff] }
  0xf8   : > { %v1084_v39 = vpop.f32.mrf.mxu0  ;;  %1153 = vmatprep.subr.bf16.mxu1 %v1368_v57 }
  0xf9   : > { %v515_v41 = vadd.f32 %v1084_v39, %v984_v60  ;;  %1109 = vmatprep.mubr.bf16.mxu1 %v538_v37  ;;  %v530_v46 = vmax.f32 %v504_v40, 0.0 }
  0xfa   : > { %v506_v43 = vpop.f32.mrf.mxu0  ;;  %1110 = vmatmul.mubr.bf16.gmra.mxu1 %v539_v38 }
  0xfb   : > { %v507_v44 = vadd.f32 %v984_v60, %v506_v43  ;;  %1161 = vmatpush3.bf16.msra.mxu1 %v1368_v57  ;;  %v533_v45 = vmax.f32 %v515_v41, 0.0 }
  0xfc   : > { %1154 = vmatprep.subr.bf16.mxu1 %v1191_v51 }
  0xfd   : > { %v531_v47 = vmax.f32 %v507_v44, 0.0  ;;  %v541_v50 = vpack.c.bf16 %v533_v45, %v532_v48 }
  0xff   : > { %v540_v49 = vpack.c.bf16 %v531_v47, %v530_v46  ;;  %1162 = vmatpush3.bf16.msra.mxu1 %v1191_v51  ;;  %v1006_v47 = vld [vmem:[%s1440_s6] ss:$0 sm:$0xff] }
 0x100   : > { %1155 = vmatprep.subr.bf16.mxu1 %v1192_v52 }
 0x101   : > { %1113 = vmatprep.mubr.bf16.mxu1 %v540_v49 }
 0x102   : > { %1114 = vmatmul.mubr.bf16.gmra.mxu1 %v541_v50 }
 0x103   : > { %1163 = vmatpush3.bf16.msra.mxu1 %v1192_v52 }
 0x104   : > { %1156 = vmatprep.subr.bf16.mxu1 %v1193_v53 }
 0x107   : > { %1164 = vmatpush3.bf16.msra.mxu1 %v1193_v53 }
 0x1aa   : > { %v1103_v54 = vpop.f32.mrf.mxu1 }
 0x1ab   : > { %v656_v60 = vadd.f32 %v1103_v54, %v997_v56 }
 0x1ac   : > { %v647_v55 = vpop.f32.mrf.mxu1 }
 0x1ad   : > { %v648_v58 = vadd.f32 %v997_v56, %v647_v55  ;;  %v712_v3 = vmax.f32 %v656_v60, 0.0 }
 0x1ae   : > { %v1104_v57 = vpop.f32.mrf.mxu1 }
 0x1af   : > { %v659_v59 = vadd.f32 %v1104_v57, %v997_v56  ;;  %v710_v1 = vmax.f32 %v648_v58, 0.0 }
 0x1b0   : > { %v650_v61 = vpop.f32.mrf.mxu1 }
 0x1b1   : > { %v651_v62 = vadd.f32 %v997_v56, %v650_v61  ;;  %v713_v63 = vmax.f32 %v659_v59, 0.0 }
 0x1b2   : > { %v1107_v0 = vpop.f32.mrf.mxu1 }
 0x1b3   : > { %v711_v2 = vmax.f32 %v651_v62, 0.0  ;;  %v727_v6 = vpack.c.bf16 %v713_v63, %v712_v3  ;;  %v672_v10 = vadd.f32 %v1107_v0, %v997_v56 }
 0x1b4   : > { %v663_v4 = vpop.f32.mrf.mxu1 }
 0x1b5   : > { %v726_v5 = vpack.c.bf16 %v711_v2, %v710_v1  ;;  %v664_v8 = vadd.f32 %v997_v56, %v663_v4  ;;  %v716_v17 = vmax.f32 %v672_v10, 0.0 }
 0x1b6   : > { %v1108_v7 = vpop.f32.mrf.mxu1 }
 0x1b7   : > { %v675_v9 = vadd.f32 %v1108_v7, %v997_v56  ;;  %1133 = vmatprep.mubr.bf16.mxu0 %v726_v5  ;;  %v714_v15 = vmax.f32 %v664_v8, 0.0 }
 0x1b8   : > { %v666_v11 = vpop.f32.mrf.mxu1  ;;  %1134 = vmatmul.mubr.bf16.vlgmr.msra.gmra.mxu0 %v727_v6 }
 0x1b9   : > { %v667_v12 = vadd.f32 %v997_v56, %v666_v11  ;;  %v717_v13 = vmax.f32 %v675_v9, 0.0 }
 0x1ba   : > { %v1111_v14 = vpop.f32.mrf.mxu1 }
 0x1bb   : > { %v715_v16 = vmax.f32 %v667_v12, 0.0  ;;  %v729_v20 = vpack.c.bf16 %v717_v13, %v716_v17  ;;  %v688_v24 = vadd.f32 %v1111_v14, %v997_v56 }
 0x1bc   : > { %v679_v18 = vpop.f32.mrf.mxu1 }
 0x1bd   : > { %v728_v19 = vpack.c.bf16 %v715_v16, %v714_v15  ;;  %v680_v22 = vadd.f32 %v997_v56, %v679_v18  ;;  %v720_v31 = vmax.f32 %v688_v24, 0.0 }
 0x1be   : > { %v1112_v21 = vpop.f32.mrf.mxu1 }
 0x1bf   : > { %v691_v23 = vadd.f32 %v1112_v21, %v997_v56  ;;  %1137 = vmatprep.mubr.bf16.mxu0 %v728_v19  ;;  %v718_v29 = vmax.f32 %v680_v22, 0.0 }
 0x1c0   : > { %v682_v25 = vpop.f32.mrf.mxu1  ;;  %1138 = vmatmul.mubr.bf16.gmra.mxu0 %v729_v20 }
 0x1c1   : > { %v683_v26 = vadd.f32 %v997_v56, %v682_v25  ;;  %v721_v27 = vmax.f32 %v691_v23, 0.0 }
 0x1c2   : > { %v1115_v28 = vpop.f32.mrf.mxu1 }
 0x1c3   : > { %v719_v30 = vmax.f32 %v683_v26, 0.0  ;;  %v731_v34 = vpack.c.bf16 %v721_v27, %v720_v31  ;;  %v704_v38 = vadd.f32 %v1115_v28, %v997_v56 }
 0x1c4   : > { %v695_v32 = vpop.f32.mrf.mxu1 }
 0x1c5   : > { %v730_v33 = vpack.c.bf16 %v719_v30, %v718_v29  ;;  %v696_v36 = vadd.f32 %v997_v56, %v695_v32  ;;  %v724_v44 = vmax.f32 %v704_v38, 0.0 }
 0x1c6   : > { %v1116_v35 = vpop.f32.mrf.mxu1 }
 0x1c7   : > { %v707_v37 = vadd.f32 %v1116_v35, %v997_v56  ;;  %1141 = vmatprep.mubr.bf16.mxu0 %v730_v33  ;;  %v722_v42 = vmax.f32 %v696_v36, 0.0 }
 0x1c8   : > { %v698_v39 = vpop.f32.mrf.mxu1  ;;  %1142 = vmatmul.mubr.bf16.gmra.mxu0 %v731_v34 }
 0x1c9   : > { %v699_v40 = vadd.f32 %v997_v56, %v698_v39  ;;  %v725_v41 = vmax.f32 %v707_v37, 0.0 }
 0x1cb   : > { %v723_v43 = vmax.f32 %v699_v40, 0.0  ;;  %v733_v46 = vpack.c.bf16 %v725_v41, %v724_v44 }
 0x1cd   : > { %v732_v45 = vpack.c.bf16 %v723_v43, %v722_v42 }
 0x1cf   : > { %1145 = vmatprep.mubr.bf16.mxu1 %v732_v45 }
 0x1d0   : > { %1146 = vmatmul.mubr.bf16.vlgmr.msra.gmra.mxu1 %v733_v46 }
 0x278   : > { %v1135_v48 = vpop.f32.mrf.mxu0 }
 0x279   : > { %v848_v49 = vadd.f32 %v1135_v48, %v1006_v47 }
 0x27a   : > { %v839_v50 = vpop.f32.mrf.mxu0 }
 0x27b   : > { %905 = vst.msk [vmem:[%s1397_s16 + $0x10] sm:$0xff] %vm902_vm3, %v848_v49  ;;  %v840_v51 = vadd.f32 %v1006_v47, %v839_v50 }
 0x27c   : > { %v1136_v52 = vpop.f32.mrf.mxu0 }
 0x27d   : > { %903 = vst.msk [vmem:[%s1397_s16] sm:$0xff] %vm902_vm3, %v840_v51  ;;  %v851_v53 = vadd.f32 %v1136_v52, %v1006_v47 }
 0x27e   : > { %v842_v54 = vpop.f32.mrf.mxu0 }
 0x27f   : > { %906 = vst.msk [vmem:[%s1397_s16 + $0x18] sm:$0xff] %vm902_vm3, %v851_v53  ;;  %v843_v55 = vadd.f32 %v1006_v47, %v842_v54 }
 0x280   : > { %v1139_v56 = vpop.f32.mrf.mxu0 }
 0x281   : > { %904 = vst.msk [vmem:[%s1397_s16 + $0x8] sm:$0xff] %vm902_vm3, %v843_v55  ;;  %v864_v57 = vadd.f32 %v1139_v56, %v1006_v47 }
 0x282   : > { %v855_v58 = vpop.f32.mrf.mxu0 }
 0x283   : > { %909 = vst.msk [vmem:[%s1397_s16 + $0x30] sm:$0xff] %vm902_vm3, %v864_v57  ;;  %v856_v59 = vadd.f32 %v1006_v47, %v855_v58 }
 0x284   : > { %v1140_v60 = vpop.f32.mrf.mxu0 }
 0x285   : > { %907 = vst.msk [vmem:[%s1397_s16 + $0x20] sm:$0xff] %vm902_vm3, %v856_v59  ;;  %v867_v61 = vadd.f32 %v1140_v60, %v1006_v47 }
 0x286   : > { %v858_v62 = vpop.f32.mrf.mxu0 }
 0x287   : > { %910 = vst.msk [vmem:[%s1397_s16 + $0x38] sm:$0xff] %vm902_vm3, %v867_v61  ;;  %v859_v63 = vadd.f32 %v1006_v47, %v858_v62 }
 0x288   : > { %v1143_v0 = vpop.f32.mrf.mxu0 }
 0x289   : > { %908 = vst.msk [vmem:[%s1397_s16 + $0x28] sm:$0xff] %vm902_vm3, %v859_v63  ;;  %v880_v1 = vadd.f32 %v1143_v0, %v1006_v47 }
 0x28a   : > { %v871_v2 = vpop.f32.mrf.mxu0 }
 0x28b   : > { %913 = vst.msk [vmem:[%s1397_s16 + $0x50] sm:$0xff] %vm902_vm3, %v880_v1  ;;  %v872_v3 = vadd.f32 %v1006_v47, %v871_v2 }
 0x28c   : > { %v1144_v4 = vpop.f32.mrf.mxu0 }
 0x28d   : > { %911 = vst.msk [vmem:[%s1397_s16 + $0x40] sm:$0xff] %vm902_vm3, %v872_v3  ;;  %v883_v5 = vadd.f32 %v1144_v4, %v1006_v47 }
 0x28e   : > { %v874_v6 = vpop.f32.mrf.mxu0 }
 0x28f   : > { %914 = vst.msk [vmem:[%s1397_s16 + $0x58] sm:$0xff] %vm902_vm3, %v883_v5  ;;  %v875_v7 = vadd.f32 %v1006_v47, %v874_v6 }
 0x290   : > { %v1147_v8 = vpop.f32.mrf.mxu1 }
 0x291   : > { %912 = vst.msk [vmem:[%s1397_s16 + $0x48] sm:$0xff] %vm902_vm3, %v875_v7  ;;  %v896_v9 = vadd.f32 %v1147_v8, %v1006_v47 }
 0x292   : > { %v887_v10 = vpop.f32.mrf.mxu1 }
 0x293   : > { %917 = vst.msk [vmem:[%s1397_s16 + $0x70] sm:$0xff] %vm902_vm3, %v896_v9  ;;  %v888_v11 = vadd.f32 %v1006_v47, %v887_v10 }
 0x294   : > { %v1148_v12 = vpop.f32.mrf.mxu1 }
 0x295   : > { %915 = vst.msk [vmem:[%s1397_s16 + $0x60] sm:$0xff] %vm902_vm3, %v888_v11  ;;  %v899_v13 = vadd.f32 %v1148_v12, %v1006_v47 }
 0x296   : > { %v890_v14 = vpop.f32.mrf.mxu1 }
 0x297   : > { %918 = vst.msk [vmem:[%s1397_s16 + $0x78] sm:$0xff] %vm902_vm3, %v899_v13  ;;  %v891_v15 = vadd.f32 %v1006_v47, %v890_v14 }
 0x299   : > { %916 = vst.msk [vmem:[%s1397_s16 + $0x68] sm:$0xff] %vm902_vm3, %v891_v15 }
 0x29a PF: > { %s17_s24 = sadd.s32 1, %s1200_s24  }
 0x29b   : > { %p14_p4 = scmp.ge.s32.totalorder %s17_s24, 4  }
 0x29d   :  { %16 = sbr.rel (!%p14_p4) target bundleno = 1 (0x1), region = 78 }

</bundles_post_ra>
